<compile_context>
chip_gen: v7x
topology: tpu7x:2x2x1
jax: 0.10.0
libtpu: 0.0.40
codegen_flags: <defaults>
</compile_context>

<pallas_src>
import functools

import jax
import jax.numpy as jnp
from jax import lax
from jax.experimental import pallas as pl
from jax.experimental.pallas import tpu as pltpu


_LANES = 128
_FOLD_VMEM_BUDGET = 32 * 1024 * 1024    # VMEM budget for the fold's table tile
_GATHER_VMEM_BUDGET = 24 * 1024 * 1024  # VMEM budget for gather intermediates


def _round_up(x, m):
    return ((x + m - 1) // m) * m


# --------------------------------------------------------------------------- #
# Kernel 1: fold Linear(weight, bias) into the embedding table (parameter-only)
# --------------------------------------------------------------------------- #
def fold_kernel(b_ref, w_ref, table_ref, t_ref, *, v_total):
    """t[0, v] = sum_d table[v, d] * w[0, d] + b   (lane-dense, zero padding).

    b_ref:     (1, 1)       f32 SMEM   fc bias
    w_ref:     (1, D)       f32 VMEM   fc weight row (constant block)
    table_ref: (TV_in, D)   any VMEM   embedding-table tile (original dtype)
    t_ref:     (1, TV_out)  f32 VMEM   folded logit-table tile
    """
    i = pl.program_id(0)
    tv_in = table_ref.shape[0]
    tv_out = t_ref.shape[1]

    tab = table_ref[...].astype(jnp.float32)   # in-kernel upcast (no HBM copy)
    w = w_ref[...].astype(jnp.float32)
    # (1, D) x (TV_in, D) contracting D on the MXU -> lane-dense (1, TV_in).
    folded = lax.dot_general(w, tab, (((1,), (1,)), ((), ())),
                             preferred_element_type=jnp.float32) + b_ref[0, 0]
    # Zero lanes corresponding to padded vocab ids so the folded table stays
    # finite (kernel 2's matmul must never see NaN/Inf garbage).
    lane = lax.broadcasted_iota(jnp.int32, (1, tv_in), 1) + i * tv_out
    folded = jnp.where(lane < v_total, folded, 0.0)

    if tv_in == tv_out:                      # tiled path: write the full block
        t_ref[...] = folded
    else:                                    # single-tile path: V < padded Vp
        t_ref[...] = jnp.zeros_like(t_ref)
        t_ref[:, :tv_in] = folded


def fold_embedding_linear(emb_table, fc_w, fc_b):
    """Parameter-only fold; cache the result, recompute only on weight update."""
    V, D = emb_table.shape
    vp = _round_up(V, 8 * _LANES)            # pad to whole (8, 128) tiles
    w_row = fc_w.reshape(1, D).astype(jnp.float32)
    b_11 = fc_b.reshape(1, 1).astype(jnp.float32)

    itemsize = emb_table.dtype.itemsize
    per_row_single = D * (itemsize + 4) + 16        # 1 buffer + in-kernel f32 copy
    per_row_tiled = D * (2 * itemsize + 4) + 16     # 2 buffers + f32 copy
    if V * per_row_single <= _FOLD_VMEM_BUDGET:
        tv_in, tv_out, n_tiles = V, vp, 1            # exact full-dim blocks
    else:
        tv = max(_LANES, (_FOLD_VMEM_BUDGET // per_row_tiled) // _LANES * _LANES)
        tv_in = tv_out = tv
        n_tiles = pl.cdiv(vp, tv)

    vmem_bytes = int(
        2 * tv_in * D * itemsize        # table blocks (double-buffered)
        + tv_in * D * 4                 # in-kernel f32 copy of the tile
        + D * 4                         # fc weight row (single-buffered)
        + 2 * tv_out * 4                # output blocks
        + 6 * tv_in * 4                 # folded / iota / mask temporaries
        + (4 << 20)                     # headroom
    )

    return pl.pallas_call(
        functools.partial(fold_kernel, v_total=V),
        out_shape=jax.ShapeDtypeStruct((1, vp), jnp.float32),
        grid=(n_tiles,),
        in_specs=[
            pl.BlockSpec(memory_space=pltpu.MemorySpace.SMEM),        # bias
            pl.BlockSpec((1, D), lambda i: (0, 0),
                         pipeline_mode=pl.Buffered(1)),               # fc weight
            pl.BlockSpec((tv_in, D), lambda i: (i, 0)),               # table tile
        ],
        out_specs=pl.BlockSpec((1, tv_out), lambda i: (0, i)),
        compiler_params=pltpu.CompilerParams(
            dimension_semantics=("parallel",),
            vmem_limit_bytes=vmem_bytes,
        ),
    )(b_11, w_row, emb_table)


# --------------------------------------------------------------------------- #
# Kernel 2: per-token gather from the folded table (the hot path)
# --------------------------------------------------------------------------- #
def gather_kernel(idx_ref, t_ref, out_ref, *, v_real):
    """out[0, n] = t[0, idx[0, n]] for one lane-dense tile of tokens.

    idx_ref: (1, TN) int32 VMEM   token indices (lane-dense)
    t_ref:   (1, Vp) f32   VMEM   folded table (bias included), Vp = R*128
    out_ref: (1, TN) f32   VMEM   per-token logits (lane-dense)
    """
    vp = t_ref.shape[1]
    r_rows = vp // _LANES
    tn = idx_ref.shape[1]

    idx = jnp.clip(idx_ref[...], 0, v_real - 1)     # also guards padded lanes
    row = jnp.right_shift(idx, 7)                   # idx // 128   (1, TN)
    col = jnp.bitwise_and(idx, _LANES - 1)          # idx %  128   (1, TN)

    t2 = t_ref[...].reshape(r_rows, _LANES)         # (R, 128)
    # Level 1 (row select) on the MXU: one-hot contraction over R -> (128, TN).
    one_hot = (lax.broadcasted_iota(jnp.int32, (r_rows, tn), 0) == row
               ).astype(jnp.float32)                # (R, TN)
    rows_t = lax.dot_general(t2, one_hot, (((0,), (0,)), ((), ())),
                             preferred_element_type=jnp.float32)   # (128, TN)
    # Level 2 (column select): 128-wide compare/select + sublane reduce.
    col_hit = lax.broadcasted_iota(jnp.int32, (_LANES, tn), 0) == col
    out_ref[...] = jnp.sum(jnp.where(col_hit, rows_t, 0.0), axis=0, keepdims=True)


def _pick_tile_n(n, r_rows):
    # Per-token VMEM in the gather kernel (bytes): one_hot + rows_t + masks +
    # idx/out blocks + temporaries.
    per_tok = 4 * (r_rows + 3 * _LANES + 16)
    cap = (_GATHER_VMEM_BUDGET // per_tok) // _LANES * _LANES
    cap = max(_LANES, min(16384, cap))
    if n <= 2 * _LANES:
        return n                               # tiny: one exact full-dim block
    half = _round_up((n + 1) // 2, _LANES)     # >=2 steps so megacore can split
    return min(cap, half)


def gather_logits(x_idx, t_folded, num_embeddings):
    """Hot path: per-token lookup into the (cached) folded table."""
    B, S = x_idx.shape
    N = B * S
    vp = t_folded.shape[1]
    r_rows = vp // _LANES
    idx_row = x_idx.reshape(1, N).astype(jnp.int32)     # lane-dense indices

    tn = _pick_tile_n(N, r_rows)
    vmem_bytes = int(
        2 * tn * 4 * 2                  # idx + out blocks (double-buffered)
        + vp * 4                        # folded table (single-buffered)
        + r_rows * tn * 4               # one_hot
        + 3 * _LANES * tn * 4           # rows_t + column-select temporaries
        + 8 * tn * 4                    # index temporaries
        + (4 << 20)                     # headroom
    )

    out_row = pl.pallas_call(
        functools.partial(gather_kernel, v_real=num_embeddings),
        out_shape=jax.ShapeDtypeStruct((1, N), jnp.float32),
        grid=(pl.cdiv(N, tn),),
        in_specs=[
            pl.BlockSpec((1, tn), lambda i: (0, i)),                  # idx tile
            pl.BlockSpec((1, vp), lambda i: (0, 0),
                         pipeline_mode=pl.Buffered(1)),               # folded table
        ],
        out_specs=pl.BlockSpec((1, tn), lambda i: (0, i)),            # lane-dense out
        compiler_params=pltpu.CompilerParams(
            dimension_semantics=("parallel",),
            vmem_limit_bytes=vmem_bytes,
        ),
    )(idx_row, t_folded)

    # squeeze(-1) of the conceptual (B, S, 1) result -> (B, S)
    return out_row.reshape(B, S)


def mlp_forward(x_idx, emb_table, fc_w, fc_b):
    """Full forward (fold + gather).  In a real model, cache the fold result."""
    t = fold_embedding_linear(emb_table, fc_w, fc_b)
    return gather_logits(x_idx, t, emb_table.shape[0])


if __name__ == "__main__":
    # Small, deterministic synthetic setup consistent with the module.
    num_embeddings = 32   # V
    embedding_dim = 32    # D
    B, S = 2, 8

    key = jax.random.PRNGKey(0)
    k_idx, k_emb, k_w, k_b = jax.random.split(key, 4)

    # Parameter shapes from nn.Embedding / nn.Linear.
    emb_table = jax.random.normal(k_emb, (num_embeddings, embedding_dim),
                                  dtype=jnp.float32)
    bound = 1.0 / (embedding_dim ** 0.5)
    fc_w = jax.random.uniform(k_w, (1, embedding_dim), jnp.float32,
                              minval=-bound, maxval=bound)
    fc_b = jax.random.uniform(k_b, (1,), jnp.float32,
                              minval=-bound, maxval=bound)
    x_idx = jax.random.randint(k_idx, (B, S), 0, num_embeddings, jnp.int32)

    # Parameter-only fold (compute once, reuse across forward calls).
    t_folded = jax.block_until_ready(fold_embedding_linear(emb_table, fc_w, fc_b))
    # Per-token hot path.
    y = jax.block_until_ready(gather_logits(x_idx, t_folded, num_embeddings))

    # Pure-JAX reference of the original module semantics.
    y_ref = (emb_table[x_idx] @ fc_w.T + fc_b)[..., 0]
    assert y.shape == (B, S)
    assert jnp.allclose(y, y_ref, atol=1e-4, rtol=1e-4)

    print("KERNEL_OK")
</pallas_src>

<mosaic_0001>
module attributes {stable_mosaic.version = 11 : i64} {
  func.func @fold_kernel(%arg0: i32, %arg1: memref<1x1xf32, #tpu.memory_space<smem>>, %arg2: memref<1x32xf32, #tpu.memory_space<vmem>>, %arg3: memref<32x32xf32, #tpu.memory_space<vmem>>, %arg4: memref<1x1024xf32, #tpu.memory_space<vmem>>) attributes {dimension_semantics = [#tpu.dimension_semantics<parallel>], iteration_bounds = array<i64: 1>, scalar_prefetch = 0 : i64, scratch_operands = 0 : i64, tpu.core_type = #tpu.core_type<tc>, window_params = [{transform_indices = @transform_0, window_bounds = array<i64: 1, 1>}, {pipeline_mode = #tpu.pipeline_mode<synchronous>, transform_indices = @transform_1, window_bounds = array<i64: 1, 32>}, {transform_indices = @transform_2, window_bounds = array<i64: 32, 32>}, {transform_indices = @transform_3, window_bounds = array<i64: 1, 1024>}]} {
    %c0 = arith.constant 0 : index
    %c0_0 = arith.constant 0 : index
    %0 = vector.load %arg3[%c0, %c0_0] : memref<32x32xf32, #tpu.memory_space<vmem>>, vector<32x32xf32>
    %c0_1 = arith.constant 0 : index
    %c0_2 = arith.constant 0 : index
    %1 = vector.load %arg2[%c0_1, %c0_2] : memref<1x32xf32, #tpu.memory_space<vmem>>, vector<1x32xf32>
    %cst = arith.constant dense<0.000000e+00> : vector<1x32xf32>
    %2 = tpu.matmul %1, %0, %cst {dimension_numbers = #tpu.dot_dimension_numbers<[1], [1], [0], [0], [0, 0, 1, 0], [], []>} : vector<1x32xf32>, vector<32x32xf32>, vector<1x32xf32> -> vector<1x32xf32>
    %c0_3 = arith.constant 0 : index
    %c0_4 = arith.constant 0 : index
    %3 = memref.load %arg1[%c0_3, %c0_4] : memref<1x1xf32, #tpu.memory_space<smem>>
    %4 = vector.broadcast %3 : f32 to vector<1x32xf32>
    %5 = arith.addf %2, %4 : vector<1x32xf32>
    %6 = tpu.iota {dimensions = array<i32: 1>} : vector<1x32xi32>
    %c1024_i32 = arith.constant 1024 : i32
    %7 = arith.muli %arg0, %c1024_i32 : i32
    %8 = vector.broadcast %7 : i32 to vector<1x32xi32>
    %9 = arith.addi %6, %8 : vector<1x32xi32>
    %c32_i32 = arith.constant 32 : i32
    %10 = vector.broadcast %c32_i32 : i32 to vector<1x32xi32>
    %11 = arith.cmpi slt, %9, %10 : vector<1x32xi32>
    %cst_5 = arith.constant 0.000000e+00 : f32
    %12 = vector.broadcast %cst_5 : f32 to vector<1x32xf32>
    %13 = arith.select %11, %5, %12 : vector<1x32xi1>, vector<1x32xf32>
    %cst_6 = arith.constant 0.000000e+00 : f32
    %14 = vector.broadcast %cst_6 : f32 to vector<1x1024xf32>
    %c0_7 = arith.constant 0 : index
    %c0_8 = arith.constant 0 : index
    %15 = vector.load %arg4[%c0_7, %c0_8] : memref<1x1024xf32, #tpu.memory_space<vmem>>, vector<1x1024xf32>
    tpu.vector_store %arg4[%c0_7, %c0_8], %14 {strides = array<i32>} : memref<1x1024xf32, #tpu.memory_space<vmem>>, vector<1x1024xf32>,
    %c0_9 = arith.constant 0 : index
    %c0_10 = arith.constant 0 : index
    %16 = vector.load %arg4[%c0_9, %c0_10] : memref<1x1024xf32, #tpu.memory_space<vmem>>, vector<1x32xf32>
    tpu.vector_store %arg4[%c0_9, %c0_10], %13 {strides = array<i32>} : memref<1x1024xf32, #tpu.memory_space<vmem>>, vector<1x32xf32>,
    return
  }
  func.func @transform_0(%arg0: i32) -> (i32, i32) {
    %c0_i32 = arith.constant 0 : i32
    %c0_i32_0 = arith.constant 0 : i32
    %c0_i32_1 = arith.constant 0 : i32
    return %c0_i32, %c0_i32_0 : i32, i32
  }
  func.func @transform_1(%arg0: i32) -> (i32, i32) {
    %c0_i32 = arith.constant 0 : i32
    %c0_i32_0 = arith.constant 0 : i32
    %c0_i32_1 = arith.constant 0 : i32
    return %c0_i32, %c0_i32_0 : i32, i32
  }
  func.func @transform_2(%arg0: i32) -> (i32, i32) {
    %c0_i32 = arith.constant 0 : i32
    %c0_i32_0 = arith.constant 0 : i32
    return %arg0, %c0_i32 : i32, i32
  }
  func.func @transform_3(%arg0: i32) -> (i32, i32) {
    %c0_i32 = arith.constant 0 : i32
    %c0_i32_0 = arith.constant 0 : i32
    return %c0_i32, %arg0 : i32, i32
  }
}

</mosaic_0001>

<bundles_post_ra>
// kernel: tpu_custom_call.1
= control target key start
LH: loop header
LB: loop body
LE: loop exit
PB: predicated region body
PF: predicated region fallthrough
CT: control target
= control target key end

     0   :  { %9 = vsyncpa [#allocation4], 0  ;;  %s292_s0 = inlined_call_operand.<no memory space> [shape: f32[1,1], index: 0, kind: input, shape index: {}]   ;;  %s293_s1 = inlined_call_operand.vmem [shape: f32[1,32], index: 1, kind: input, shape index: {}]   ;;  %s294_s2 = inlined_call_operand.hbm [shape: f32[32,32], index: 2, kind: input, shape index: {}]   ;;  %s295_s3 = inlined_call_operand.hbm [shape: f32[1,1024], index: 3, kind: output, shape index: {}]  }
   0x1   :  { %10 = vsyncpa [#allocation5], 0  ;;  %s235_s12 = smov [#allocation3]   ;;  %s187_s16 = scalar_lea.hbm %s294_s2, 512 }
   0x2   :  { %s20_s13 = sshll.u32 %s235_s12, 4  ;;  %p188_p0 = scmp.ne.s32.totalorder %s294_s2, %s187_s16  ;;  %s21_s13 = int_to_ptr.vmem [resolvable:$true] %s20_s13 }
   0x3   :  { %p191_p1 = scmp.lt.u32.totalorder %s187_s16, %s294_s2 }
   0x5   :  { %p193_p2 = pnand %p191_p1, %p188_p0 }
   0x7   :  { %196 = shalt.err (!%p193_p2)
}
   0x8   :  { %s197_s21 = scalar_lea.vmem %s21_s13, 512  ;;  %p202_p4 = scmp.lt.s32.totalorder %s21_s13, %s21_s13 }
   0x9   :  { %p198_p3 = scmp.ne.s32.totalorder %s21_s13, %s197_s21  ;;  %p203_p5 = scmp.lt.s32.totalorder %s197_s21, %s197_s21 }
   0xb   :  { %p204_p6 = por %p203_p5, %p202_p4 }
   0xd   :  { %p205_p7 = pnand %p204_p6, %p198_p3 }
   0xf   :  { %208 = shalt.err (!%p205_p7)
}
  0x10   :  { %s236_s22 = smov 128   ;;  %s237_s23 = smov 8  }
  0x11   :  { %26 = dma.hbm_to_vmem [thread:$0]  %s294_s2, 512, %s21_s13, [#allocation4], %s236_s22, %s236_s22, %s237_s23  }
  0x12   :  { %231 = dma.done.wait [#allocation4], 512  }
  0x13   :  { %232 = vsyncadd [#allocation4], 4294966784  ;;  %v238_v0 = vmov 0.0|0.0   ;;  %vm239_vm0 = vmmov 0   ;;  %v240_v1 = vmov 0.0   ;;  %vm37_vm1 = vcmask 261120  }
  0x14   :  { %172 = vmatprep.subr.bf16.mxu0 %v238_v0  ;;  %169 = vmatprep.mubr.msk.f32.mxu0 %vm239_vm0, %v240_v1  ;;  %130 = vst [vmem:[#allocation6] sm:$0xff] %v240_v1  ;;  %v30_v2 = vld [vmem:[#allocation3] sm:$0xff]  ;;  %v31_v3 = vld [vmem:[#allocation3 + $0x8] sm:$0xff]  ;;  %vm174_vm2 = vmpackc.low %vm37_vm1, %vm37_vm1  ;;  %v123_v9 = vlaneseq  ;;  %v36_v11 = vstv %s292_s0  ;;  %s241_s29 = smov [#allocation6]  }
  0x15   :  { %v173_v4 = vpack.c.bf16 %v31_v3, %v30_v2  ;;  %v32_v5 = vld [vmem:[#allocation3 + $0x10] sm:$0xff]  ;;  %v33_v6 = vld [vmem:[#allocation3 + $0x18] sm:$0xff]  ;;  %v34_v8 = vld [vmem:[%s293_s1] sm:$0x1]  ;;  %s142_s30 = sshll.u32 %s241_s29, 4  ;;  %s143_s30 = int_to_ptr.vmem [resolvable:$true] %s142_s30 }
  0x16   :  { %v177_v7 = vpack.c.bf16 %v33_v6, %v32_v5  ;;  %v124_v10 = vand.u32 127, %v123_v9  ;;  %vm133_vm4 = vcmp.lt.s32.totalorder %v123_v9, 32  ;;  %s209_s4 = scalar_lea.vmem %s143_s30, 128  ;;  %p214_p9 = scmp.lt.s32.totalorder %s143_s30, %s143_s30 }
  0x17   :  { %175 = vmatpush3.bf16.xpose.msk.msra.mxu0 %vm174_vm2, %v173_v4  ;;  %p210_p8 = scmp.ne.s32.totalorder %s143_s30, %s209_s4  ;;  %p215_p10 = scmp.lt.s32.totalorder %s209_s4, %s209_s4 }
  0x18   :  { %176 = vmatprep.subr.bf16.mxu0 %v238_v0  ;;  %vm128_vm3 = vcmp.lt.s32.totalorder %v124_v10, 32 }
  0x19   :  { %p216_p11 = por %p215_p10, %p214_p9 }
  0x1b   :  { %p217_p12 = pnand %p216_p11, %p210_p8 }
  0x1f   :  { %179 = vmatpush3.bf16.xpose.msk.msra.mxu0 %vm174_vm2, %v177_v7 }
  0x26   :  { %170 = vmatmul.mubr.msk.f32.vlgmr.msra.gmra.mrb[0].mxu0 %vm37_vm1, %v34_v8 }
  0xf9   :  { %v119_v12 = vpop.f32.mrb[0].mxu0 }
  0xfa   :  { %v120_v13 = vadd.f32 %v119_v12, %v36_v11  ;;  %v171_v14 = vpop.f32.mrb[1].mxu0 }
  0xfc   :  { %v129_v15 = vsel %vm128_vm3, %v120_v13, 0.0 }
  0xfd   :  { %135 = vst.msk [vmem:[#allocation6] sm:$0x1] %vm133_vm4, %v129_v15 }
  0xfe   :  { %220 = shalt.err (!%p217_p12)
}
  0xff   :  { %s221_s0 = scalar_lea.hbm %s295_s3, 128 }
 0x100   :  { %p222_p13 = scmp.ne.s32.totalorder %s295_s3, %s221_s0  ;;  %p225_p0 = scmp.lt.u32.totalorder %s221_s0, %s295_s3 }
 0x102   :  { %p227_p1 = pnand %p225_p0, %p222_p13 }
 0x104   :  { %230 = shalt.err (!%p227_p1)
}
 0x105   :  { %145 = dma.vmem_to_hbm [thread:$0]  %s143_s30, 128, %s295_s3, [#allocation5]  }
 0x106   :  { %233 = dma.done.wait [#allocation5], 128  }
 0x107   :  { %234 = vsyncadd [#allocation5], 4294967168 }
 0x108   :  { %149 = vsyncpa [#allocation4], 1 }
 0x109   :  { %150 = vsyncpa [#allocation5], 1 }

</bundles_post_ra>
